<compile_context>
chip_gen: v6e
topology: v6e:2x2x1
jax: 0.10.0
libtpu: 0.0.40
codegen_flags: <defaults>
</compile_context>

<pallas_src>
import functools

import jax
import jax.numpy as jnp
from jax import lax
from jax.experimental import pallas as pl
from jax.experimental.pallas import tpu as pltpu

# Problem sizes (small, consistent with the forward pass).
N, C_IN, H, W = 2, 3, 16, 16     # H, W must be powers of two (bit-tricks below)
C_MID = 8                        # backbone conv channels (== fc.in_features)
OUT_LEN = 5                      # output_length
HW = H * W
NHW = N * H * W                  # 512 -> lane axis of the kernel
K_TAPS = 9 * C_IN                # 27 im2col rows
K_PAD = 32                       # padded to a full sublane tile
W_SHIFT = W.bit_length() - 1


def scene_kernel(x_ref, scale_ref, bias_ref, w_ref, cb_ref, fw_ref, fb_ref,
                 out_ref, patches_ref):
    """Single invocation; everything lane-dense on the N*H*W axis.

    x_ref      : [C_IN, NHW]     f32  (batch+spatial flattened on lanes)
    scale_ref  : [C_IN, 1]       f32  (1 / (255 * std))
    bias_ref   : [C_IN, 1]       f32  (-mean / std)
    w_ref      : [C_MID, K_PAD]  f32  (conv weight as im2col matrix, zero-padded)
    cb_ref     : [C_MID, 1]      f32
    fw_ref     : [OUT_LEN, C_MID]f32
    fb_ref     : [OUT_LEN, 1]    f32
    out_ref    : [OUT_LEN, N]    f32
    patches_ref: VMEM [K_PAD, NHW] f32 (im2col patches scratch)
    """
    # x/255 and Normalize(mean, std) fused into one FMA (VPU).
    xn = x_ref[...] * scale_ref[...] + bias_ref[...]                 # [C_IN, NHW]

    # Per-lane (y, x) coordinates inside each image (powers of two -> bit ops).
    col = lax.broadcasted_iota(jnp.int32, (C_IN, NHW), 1)
    yc = jnp.bitwise_and(jnp.right_shift(col, W_SHIFT), H - 1)
    xc = jnp.bitwise_and(col, W - 1)

    # Build the im2col patches: for each (dy, dx) tap, a lane roll of the flat
    # image + a border mask (zero padding semantics). Rolls use the XLU,
    # masks the VPU; patches land lane-dense in an aligned VMEM scratch.
    k = 0
    for dy in (-1, 0, 1):
        for dx in (-1, 0, 1):
            off = dy * W + dx
            if off == 0:
                shifted = xn
            else:
                shifted = pltpu.roll(xn, shift=(-off) % NHW, axis=1)
            conds = []
            if dy == -1:
                conds.append(yc >= 1)
            elif dy == 1:
                conds.append(yc <= H - 2)
            if dx == -1:
                conds.append(xc >= 1)
            elif dx == 1:
                conds.append(xc <= W - 2)
            if conds:
                mask = functools.reduce(jnp.logical_and, conds)
                shifted = jnp.where(mask, shifted, 0.0)
            patches_ref[pl.ds(k * C_IN, C_IN), :] = shifted
            k += 1
    # Zero the padded tail rows (w columns there are zero too).
    patches_ref[pl.ds(K_TAPS, K_PAD - K_TAPS), :] = jnp.zeros(
        (K_PAD - K_TAPS, NHW), jnp.float32)

    # Single im2col matmul on the MXU: [C_MID, 32] x [32, NHW] -> [C_MID, NHW].
    hidden = jnp.dot(w_ref[...], patches_ref[...],
                     preferred_element_type=jnp.float32)
    hidden = jnp.maximum(hidden + cb_ref[...], 0.0)                  # bias + ReLU

    # fc before pooling (linear ops commute): [OUT, C_MID] x [C_MID, NHW].
    t = jnp.dot(fw_ref[...], hidden, preferred_element_type=jnp.float32)

    # Global average pool = per-image lane reduction, then add fc bias.
    inv_hw = 1.0 / HW
    for n in range(N):
        seg = t[:, n * HW:(n + 1) * HW]                              # aligned slice
        col_n = jnp.sum(seg, axis=1, keepdims=True) * inv_hw + fb_ref[...]
        out_ref[:, pl.ds(n, 1)] = col_n                              # [OUT_LEN, 1]


def _idx0(i):
    return (0, 0)


@jax.jit
def scene_forward(x_nchw, params):
    """x_nchw: uint8 [N, C_IN, H, W] (PyTorch convention). Returns [N, OUT_LEN]."""
    mean, std, cw, cb, fw, fb = params

    # Glue / layout plumbing (free XLA ops): .float() cast, spatial-on-lanes
    # layout, fused-normalization constants, im2col weight matrix.
    x2 = x_nchw.astype(jnp.float32).transpose(1, 0, 2, 3).reshape(C_IN, NHW)
    scale = (1.0 / (255.0 * std)).reshape(C_IN, 1)
    bias = (-mean / std).reshape(C_IN, 1)
    w_mat = jnp.transpose(cw, (3, 0, 1, 2)).reshape(C_MID, K_TAPS)
    w_mat = jnp.pad(w_mat, ((0, 0), (0, K_PAD - K_TAPS)))
    cb2 = cb.reshape(C_MID, 1)
    fw2 = fw.T                                                       # [OUT, C_MID]
    fb2 = fb.reshape(OUT_LEN, 1)

    out = pl.pallas_call(
        scene_kernel,
        out_shape=jax.ShapeDtypeStruct((OUT_LEN, N), jnp.float32),
        grid_spec=pltpu.PrefetchScalarGridSpec(
            num_scalar_prefetch=0,
            grid=(1,),                       # single step: whole batch at once
            in_specs=[
                pl.BlockSpec((C_IN, NHW), _idx0),
                pl.BlockSpec((C_IN, 1), _idx0),
                pl.BlockSpec((C_IN, 1), _idx0),
                pl.BlockSpec((C_MID, K_PAD), _idx0),
                pl.BlockSpec((C_MID, 1), _idx0),
                pl.BlockSpec((OUT_LEN, C_MID), _idx0),
                pl.BlockSpec((OUT_LEN, 1), _idx0),
            ],
            out_specs=pl.BlockSpec((OUT_LEN, N), _idx0),
            scratch_shapes=[pltpu.VMEM((K_PAD, NHW), jnp.float32)],
        ),
        compiler_params=pltpu.CompilerParams(
            dimension_semantics=("arbitrary",)),
    )(x2, scale, bias, w_mat, cb2, fw2, fb2)

    return out.T                                                     # [N, OUT_LEN]


def reference_forward(x_nchw, params):
    """Plain-JAX reference matching the PyTorch semantics (NCHW)."""
    mean, std, cw, cb, fw, fb = params
    x = x_nchw.astype(jnp.float32) / 255.0
    x = (x - mean.reshape(1, C_IN, 1, 1)) / std.reshape(1, C_IN, 1, 1)
    w_oihw = jnp.transpose(cw, (3, 2, 0, 1))                         # [O, I, KH, KW]
    y = lax.conv_general_dilated(
        x, w_oihw, window_strides=(1, 1), padding="SAME",
        dimension_numbers=("NCHW", "OIHW", "NCHW"))
    y = jnp.maximum(y + cb.reshape(1, C_MID, 1, 1), 0.0)
    pooled = jnp.mean(y, axis=(2, 3))                                # [N, C_MID]
    return pooled @ fw + fb


def make_params(key):
    k1, k2, k3, k4 = jax.random.split(key, 4)
    mean = jnp.array([0.485, 0.456, 0.406], jnp.float32)
    std = jnp.array([0.229, 0.224, 0.225], jnp.float32)
    cw = 0.1 * jax.random.normal(k1, (3, 3, C_IN, C_MID), jnp.float32)
    cb = 0.1 * jax.random.normal(k2, (C_MID,), jnp.float32)
    fw = 0.1 * jax.random.normal(k3, (C_MID, OUT_LEN), jnp.float32)
    fb = 0.1 * jax.random.normal(k4, (OUT_LEN,), jnp.float32)
    return mean, std, cw, cb, fw, fb


if __name__ == "__main__":
    root = jax.random.PRNGKey(0)
    kparam, kx = jax.random.split(root)
    params = make_params(kparam)
    x_nchw = jax.random.randint(kx, (N, C_IN, H, W), 0, 256,
                                dtype=jnp.int32).astype(jnp.uint8)

    logits = scene_forward(x_nchw, params)
    jax.block_until_ready(logits)

    ref = reference_forward(x_nchw, params)
    assert logits.shape == (N, OUT_LEN)
    assert jnp.allclose(logits, ref, rtol=2e-3, atol=2e-3), (logits, ref)

    print("KERNEL_OK")
</pallas_src>

<mosaic_0001>
module attributes {stable_mosaic.version = 11 : i64} {
  func.func @scene_kernel(%arg0: i32, %arg1: memref<3x512xf32, #tpu.memory_space<vmem>>, %arg2: memref<3x1xf32, #tpu.memory_space<vmem>>, %arg3: memref<3x1xf32, #tpu.memory_space<vmem>>, %arg4: memref<8x32xf32, #tpu.memory_space<vmem>>, %arg5: memref<8x1xf32, #tpu.memory_space<vmem>>, %arg6: memref<5x8xf32, #tpu.memory_space<vmem>>, %arg7: memref<5x1xf32, #tpu.memory_space<vmem>>, %arg8: memref<5x2xf32, #tpu.memory_space<vmem>>, %arg9: memref<32x512xf32, #tpu.memory_space<vmem>>) attributes {dimension_semantics = [#tpu.dimension_semantics<arbitrary>], iteration_bounds = array<i64: 1>, scalar_prefetch = 0 : i64, scratch_operands = 1 : i64, tpu.core_type = #tpu.core_type<tc>, window_params = [{pipeline_mode = #tpu.pipeline_mode<synchronous>, transform_indices = @transform_0, window_bounds = array<i64: 3, 512>}, {pipeline_mode = #tpu.pipeline_mode<synchronous>, transform_indices = @transform_1, window_bounds = array<i64: 3, 1>}, {pipeline_mode = #tpu.pipeline_mode<synchronous>, transform_indices = @transform_2, window_bounds = array<i64: 3, 1>}, {pipeline_mode = #tpu.pipeline_mode<synchronous>, transform_indices = @transform_3, window_bounds = array<i64: 8, 32>}, {pipeline_mode = #tpu.pipeline_mode<synchronous>, transform_indices = @transform_4, window_bounds = array<i64: 8, 1>}, {pipeline_mode = #tpu.pipeline_mode<synchronous>, transform_indices = @transform_5, window_bounds = array<i64: 5, 8>}, {pipeline_mode = #tpu.pipeline_mode<synchronous>, transform_indices = @transform_6, window_bounds = array<i64: 5, 1>}, {pipeline_mode = #tpu.pipeline_mode<synchronous>, transform_indices = @transform_7, window_bounds = array<i64: 5, 2>}]} {
    %c0 = arith.constant 0 : index
    %c0_0 = arith.constant 0 : index
    %0 = vector.load %arg1[%c0, %c0_0] : memref<3x512xf32, #tpu.memory_space<vmem>>, vector<3x512xf32>
    %c0_1 = arith.constant 0 : index
    %c0_2 = arith.constant 0 : index
    %1 = vector.load %arg2[%c0_1, %c0_2] : memref<3x1xf32, #tpu.memory_space<vmem>>, vector<3x1xf32>
    %2 = vector.broadcast %1 : vector<3x1xf32> to vector<3x512xf32>
    %3 = arith.mulf %0, %2 : vector<3x512xf32>
    %c0_3 = arith.constant 0 : index
    %c0_4 = arith.constant 0 : index
    %4 = vector.load %arg3[%c0_3, %c0_4] : memref<3x1xf32, #tpu.memory_space<vmem>>, vector<3x1xf32>
    %5 = vector.broadcast %4 : vector<3x1xf32> to vector<3x512xf32>
    %6 = arith.addf %3, %5 : vector<3x512xf32>
    %7 = tpu.iota {dimensions = array<i32: 1>} : vector<3x512xi32>
    %c4_i32 = arith.constant 4 : i32
    %8 = vector.broadcast %c4_i32 : i32 to vector<3x512xi32>
    %9 = arith.shrsi %7, %8 : vector<3x512xi32>
    %c15_i32 = arith.constant 15 : i32
    %10 = vector.broadcast %c15_i32 : i32 to vector<3x512xi32>
    %11 = arith.andi %9, %10 : vector<3x512xi32>
    %c15_i32_5 = arith.constant 15 : i32
    %12 = vector.broadcast %c15_i32_5 : i32 to vector<3x512xi32>
    %13 = arith.andi %7, %12 : vector<3x512xi32>
    %c17_i32 = arith.constant 17 : i32
    %14 = tpu.dynamic_rotate %6 by %c17_i32 dim 1 : vector<3x512xf32>, i32 -> vector<3x512xf32>
    %c1_i32 = arith.constant 1 : i32
    %15 = vector.broadcast %c1_i32 : i32 to vector<3x512xi32>
    %16 = arith.cmpi sge, %11, %15 : vector<3x512xi32>
    %c1_i32_6 = arith.constant 1 : i32
    %17 = vector.broadcast %c1_i32_6 : i32 to vector<3x512xi32>
    %18 = arith.cmpi sge, %13, %17 : vector<3x512xi32>
    %19 = arith.andi %16, %18 : vector<3x512xi1>
    %cst = arith.constant 0.000000e+00 : f32
    %20 = vector.broadcast %cst : f32 to vector<3x512xf32>
    %21 = arith.select %19, %14, %20 : vector<3x512xi1>, vector<3x512xf32>
    %c0_7 = arith.constant 0 : index
    %c0_8 = arith.constant 0 : index
    %22 = vector.load %arg9[%c0_7, %c0_8] : memref<32x512xf32, #tpu.memory_space<vmem>>, vector<3x512xf32>
    tpu.vector_store %arg9[%c0_7, %c0_8], %21 {strides = array<i32>} : memref<32x512xf32, #tpu.memory_space<vmem>>, vector<3x512xf32>,
    %c16_i32 = arith.constant 16 : i32
    %23 = tpu.dynamic_rotate %6 by %c16_i32 dim 1 : vector<3x512xf32>, i32 -> vector<3x512xf32>
    %c1_i32_9 = arith.constant 1 : i32
    %24 = vector.broadcast %c1_i32_9 : i32 to vector<3x512xi32>
    %25 = arith.cmpi sge, %11, %24 : vector<3x512xi32>
    %cst_10 = arith.constant 0.000000e+00 : f32
    %26 = vector.broadcast %cst_10 : f32 to vector<3x512xf32>
    %27 = arith.select %25, %23, %26 : vector<3x512xi1>, vector<3x512xf32>
    %c3 = arith.constant 3 : index
    %c0_11 = arith.constant 0 : index
    %28 = vector.load %arg9[%c3, %c0_11] : memref<32x512xf32, #tpu.memory_space<vmem>>, vector<3x512xf32>
    tpu.vector_store %arg9[%c3, %c0_11], %27 {strides = array<i32>} : memref<32x512xf32, #tpu.memory_space<vmem>>, vector<3x512xf32>,
    %c15_i32_12 = arith.constant 15 : i32
    %29 = tpu.dynamic_rotate %6 by %c15_i32_12 dim 1 : vector<3x512xf32>, i32 -> vector<3x512xf32>
    %c1_i32_13 = arith.constant 1 : i32
    %30 = vector.broadcast %c1_i32_13 : i32 to vector<3x512xi32>
    %31 = arith.cmpi sge, %11, %30 : vector<3x512xi32>
    %c14_i32 = arith.constant 14 : i32
    %32 = vector.broadcast %c14_i32 : i32 to vector<3x512xi32>
    %33 = arith.cmpi sle, %13, %32 : vector<3x512xi32>
    %34 = arith.andi %31, %33 : vector<3x512xi1>
    %cst_14 = arith.constant 0.000000e+00 : f32
    %35 = vector.broadcast %cst_14 : f32 to vector<3x512xf32>
    %36 = arith.select %34, %29, %35 : vector<3x512xi1>, vector<3x512xf32>
    %c6 = arith.constant 6 : index
    %c0_15 = arith.constant 0 : index
    %37 = vector.load %arg9[%c6, %c0_15] : memref<32x512xf32, #tpu.memory_space<vmem>>, vector<3x512xf32>
    tpu.vector_store %arg9[%c6, %c0_15], %36 {strides = array<i32>} : memref<32x512xf32, #tpu.memory_space<vmem>>, vector<3x512xf32>,
    %c1_i32_16 = arith.constant 1 : i32
    %38 = tpu.dynamic_rotate %6 by %c1_i32_16 dim 1 : vector<3x512xf32>, i32 -> vector<3x512xf32>
    %c1_i32_17 = arith.constant 1 : i32
    %39 = vector.broadcast %c1_i32_17 : i32 to vector<3x512xi32>
    %40 = arith.cmpi sge, %13, %39 : vector<3x512xi32>
    %cst_18 = arith.constant 0.000000e+00 : f32
    %41 = vector.broadcast %cst_18 : f32 to vector<3x512xf32>
    %42 = arith.select %40, %38, %41 : vector<3x512xi1>, vector<3x512xf32>
    %c9 = arith.constant 9 : index
    %c0_19 = arith.constant 0 : index
    %43 = vector.load %arg9[%c9, %c0_19] : memref<32x512xf32, #tpu.memory_space<vmem>>, vector<3x512xf32>
    tpu.vector_store %arg9[%c9, %c0_19], %42 {strides = array<i32>} : memref<32x512xf32, #tpu.memory_space<vmem>>, vector<3x512xf32>,
    %c12 = arith.constant 12 : index
    %c0_20 = arith.constant 0 : index
    %44 = vector.load %arg9[%c12, %c0_20] : memref<32x512xf32, #tpu.memory_space<vmem>>, vector<3x512xf32>
    tpu.vector_store %arg9[%c12, %c0_20], %6 {strides = array<i32>} : memref<32x512xf32, #tpu.memory_space<vmem>>, vector<3x512xf32>,
    %c511_i32 = arith.constant 511 : i32
    %45 = tpu.dynamic_rotate %6 by %c511_i32 dim 1 : vector<3x512xf32>, i32 -> vector<3x512xf32>
    %c14_i32_21 = arith.constant 14 : i32
    %46 = vector.broadcast %c14_i32_21 : i32 to vector<3x512xi32>
    %47 = arith.cmpi sle, %13, %46 : vector<3x512xi32>
    %cst_22 = arith.constant 0.000000e+00 : f32
    %48 = vector.broadcast %cst_22 : f32 to vector<3x512xf32>
    %49 = arith.select %47, %45, %48 : vector<3x512xi1>, vector<3x512xf32>
    %c15 = arith.constant 15 : index
    %c0_23 = arith.constant 0 : index
    %50 = vector.load %arg9[%c15, %c0_23] : memref<32x512xf32, #tpu.memory_space<vmem>>, vector<3x512xf32>
    tpu.vector_store %arg9[%c15, %c0_23], %49 {strides = array<i32>} : memref<32x512xf32, #tpu.memory_space<vmem>>, vector<3x512xf32>,
    %c497_i32 = arith.constant 497 : i32
    %51 = tpu.dynamic_rotate %6 by %c497_i32 dim 1 : vector<3x512xf32>, i32 -> vector<3x512xf32>
    %c14_i32_24 = arith.constant 14 : i32
    %52 = vector.broadcast %c14_i32_24 : i32 to vector<3x512xi32>
    %53 = arith.cmpi sle, %11, %52 : vector<3x512xi32>
    %c1_i32_25 = arith.constant 1 : i32
    %54 = vector.broadcast %c1_i32_25 : i32 to vector<3x512xi32>
    %55 = arith.cmpi sge, %13, %54 : vector<3x512xi32>
    %56 = arith.andi %53, %55 : vector<3x512xi1>
    %cst_26 = arith.constant 0.000000e+00 : f32
    %57 = vector.broadcast %cst_26 : f32 to vector<3x512xf32>
    %58 = arith.select %56, %51, %57 : vector<3x512xi1>, vector<3x512xf32>
    %c18 = arith.constant 18 : index
    %c0_27 = arith.constant 0 : index
    %59 = vector.load %arg9[%c18, %c0_27] : memref<32x512xf32, #tpu.memory_space<vmem>>, vector<3x512xf32>
    tpu.vector_store %arg9[%c18, %c0_27], %58 {strides = array<i32>} : memref<32x512xf32, #tpu.memory_space<vmem>>, vector<3x512xf32>,
    %c496_i32 = arith.constant 496 : i32
    %60 = tpu.dynamic_rotate %6 by %c496_i32 dim 1 : vector<3x512xf32>, i32 -> vector<3x512xf32>
    %c14_i32_28 = arith.constant 14 : i32
    %61 = vector.broadcast %c14_i32_28 : i32 to vector<3x512xi32>
    %62 = arith.cmpi sle, %11, %61 : vector<3x512xi32>
    %cst_29 = arith.constant 0.000000e+00 : f32
    %63 = vector.broadcast %cst_29 : f32 to vector<3x512xf32>
    %64 = arith.select %62, %60, %63 : vector<3x512xi1>, vector<3x512xf32>
    %c21 = arith.constant 21 : index
    %c0_30 = arith.constant 0 : index
    %65 = vector.load %arg9[%c21, %c0_30] : memref<32x512xf32, #tpu.memory_space<vmem>>, vector<3x512xf32>
    tpu.vector_store %arg9[%c21, %c0_30], %64 {strides = array<i32>} : memref<32x512xf32, #tpu.memory_space<vmem>>, vector<3x512xf32>,
    %c495_i32 = arith.constant 495 : i32
    %66 = tpu.dynamic_rotate %6 by %c495_i32 dim 1 : vector<3x512xf32>, i32 -> vector<3x512xf32>
    %c14_i32_31 = arith.constant 14 : i32
    %67 = vector.broadcast %c14_i32_31 : i32 to vector<3x512xi32>
    %68 = arith.cmpi sle, %11, %67 : vector<3x512xi32>
    %c14_i32_32 = arith.constant 14 : i32
    %69 = vector.broadcast %c14_i32_32 : i32 to vector<3x512xi32>
    %70 = arith.cmpi sle, %13, %69 : vector<3x512xi32>
    %71 = arith.andi %68, %70 : vector<3x512xi1>
    %cst_33 = arith.constant 0.000000e+00 : f32
    %72 = vector.broadcast %cst_33 : f32 to vector<3x512xf32>
    %73 = arith.select %71, %66, %72 : vector<3x512xi1>, vector<3x512xf32>
    %c24 = arith.constant 24 : index
    %c0_34 = arith.constant 0 : index
    %74 = vector.load %arg9[%c24, %c0_34] : memref<32x512xf32, #tpu.memory_space<vmem>>, vector<3x512xf32>
    tpu.vector_store %arg9[%c24, %c0_34], %73 {strides = array<i32>} : memref<32x512xf32, #tpu.memory_space<vmem>>, vector<3x512xf32>,
    %cst_35 = arith.constant 0.000000e+00 : f32
    %75 = vector.broadcast %cst_35 : f32 to vector<5x512xf32>
    %c27 = arith.constant 27 : index
    %c0_36 = arith.constant 0 : index
    %76 = vector.load %arg9[%c27, %c0_36] : memref<32x512xf32, #tpu.memory_space<vmem>>, vector<5x512xf32>
    tpu.vector_store %arg9[%c27, %c0_36], %75 {strides = array<i32>} : memref<32x512xf32, #tpu.memory_space<vmem>>, vector<5x512xf32>,
    %c0_37 = arith.constant 0 : index
    %c0_38 = arith.constant 0 : index
    %77 = vector.load %arg4[%c0_37, %c0_38] : memref<8x32xf32, #tpu.memory_space<vmem>>, vector<8x32xf32>
    %c0_39 = arith.constant 0 : index
    %c0_40 = arith.constant 0 : index
    %78 = vector.load %arg9[%c0_39, %c0_40] : memref<32x512xf32, #tpu.memory_space<vmem>>, vector<32x512xf32>
    %cst_41 = arith.constant dense<0.000000e+00> : vector<8x512xf32>
    %79 = tpu.matmul %77, %78, %cst_41 {dimension_numbers = #tpu.dot_dimension_numbers<[1], [0], [0], [1], [0, 0, 1, 1], [], []>} : vector<8x32xf32>, vector<32x512xf32>, vector<8x512xf32> -> vector<8x512xf32>
    %c0_42 = arith.constant 0 : index
    %c0_43 = arith.constant 0 : index
    %80 = vector.load %arg5[%c0_42, %c0_43] : memref<8x1xf32, #tpu.memory_space<vmem>>, vector<8x1xf32>
    %81 = vector.broadcast %80 : vector<8x1xf32> to vector<8x512xf32>
    %82 = arith.addf %79, %81 : vector<8x512xf32>
    %cst_44 = arith.constant 0.000000e+00 : f32
    %83 = vector.broadcast %cst_44 : f32 to vector<8x512xf32>
    %84 = arith.maximumf %82, %83 : vector<8x512xf32>
    %c0_45 = arith.constant 0 : index
    %c0_46 = arith.constant 0 : index
    %85 = vector.load %arg6[%c0_45, %c0_46] : memref<5x8xf32, #tpu.memory_space<vmem>>, vector<5x8xf32>
    %cst_47 = arith.constant dense<0.000000e+00> : vector<5x512xf32>
    %86 = tpu.matmul %85, %84, %cst_47 {dimension_numbers = #tpu.dot_dimension_numbers<[1], [0], [0], [1], [0, 0, 1, 1], [], []>} : vector<5x8xf32>, vector<8x512xf32>, vector<5x512xf32> -> vector<5x512xf32>
    %87 = vector.extract_strided_slice %86 {offsets = [0, 0], sizes = [5, 256], strides = [1, 1]} : vector<5x512xf32> to vector<5x256xf32>
    %cst_48 = arith.constant dense<0.000000e+00> : vector<5xf32>
    %88 = vector.multi_reduction <add>, %87, %cst_48 [1] : vector<5x256xf32> to vector<5xf32>
    %89 = vector.shape_cast %88 : vector<5xf32> to vector<5x1xf32>
    %cst_49 = arith.constant 3.906250e-03 : f32
    %90 = vector.broadcast %cst_49 : f32 to vector<5x1xf32>
    %91 = arith.mulf %89, %90 : vector<5x1xf32>
    %c0_50 = arith.constant 0 : index
    %c0_51 = arith.constant 0 : index
    %92 = vector.load %arg7[%c0_50, %c0_51] : memref<5x1xf32, #tpu.memory_space<vmem>>, vector<5x1xf32>
    %93 = arith.addf %91, %92 : vector<5x1xf32>
    %c0_52 = arith.constant 0 : index
    %c0_53 = arith.constant 0 : index
    %94 = vector.load %arg8[%c0_52, %c0_53] : memref<5x2xf32, #tpu.memory_space<vmem>>, vector<5x1xf32>
    tpu.vector_store %arg8[%c0_52, %c0_53], %93 {strides = array<i32>} : memref<5x2xf32, #tpu.memory_space<vmem>>, vector<5x1xf32>,
    %95 = vector.extract_strided_slice %86 {offsets = [0, 256], sizes = [5, 256], strides = [1, 1]} : vector<5x512xf32> to vector<5x256xf32>
    %cst_54 = arith.constant dense<0.000000e+00> : vector<5xf32>
    %96 = vector.multi_reduction <add>, %95, %cst_54 [1] : vector<5x256xf32> to vector<5xf32>
    %97 = vector.shape_cast %96 : vector<5xf32> to vector<5x1xf32>
    %cst_55 = arith.constant 3.906250e-03 : f32
    %98 = vector.broadcast %cst_55 : f32 to vector<5x1xf32>
    %99 = arith.mulf %97, %98 : vector<5x1xf32>
    %c0_56 = arith.constant 0 : index
    %c0_57 = arith.constant 0 : index
    %100 = vector.load %arg7[%c0_56, %c0_57] : memref<5x1xf32, #tpu.memory_space<vmem>>, vector<5x1xf32>
    %101 = arith.addf %99, %100 : vector<5x1xf32>
    %c0_58 = arith.constant 0 : index
    %c1 = arith.constant 1 : index
    %102 = vector.load %arg8[%c0_58, %c1] : memref<5x2xf32, #tpu.memory_space<vmem>>, vector<5x1xf32>
    tpu.vector_store %arg8[%c0_58, %c1], %101 {strides = array<i32>} : memref<5x2xf32, #tpu.memory_space<vmem>>, vector<5x1xf32>,
    return
  }
  func.func @transform_0(%arg0: i32) -> (i32, i32) {
    %c0_i32 = arith.constant 0 : i32
    %c0_i32_0 = arith.constant 0 : i32
    %c0_i32_1 = arith.constant 0 : i32
    return %c0_i32, %c0_i32_0 : i32, i32
  }
  func.func @transform_1(%arg0: i32) -> (i32, i32) {
    %c0_i32 = arith.constant 0 : i32
    %c0_i32_0 = arith.constant 0 : i32
    %c0_i32_1 = arith.constant 0 : i32
    return %c0_i32, %c0_i32_0 : i32, i32
  }
  func.func @transform_2(%arg0: i32) -> (i32, i32) {
    %c0_i32 = arith.constant 0 : i32
    %c0_i32_0 = arith.constant 0 : i32
    %c0_i32_1 = arith.constant 0 : i32
    return %c0_i32, %c0_i32_0 : i32, i32
  }
  func.func @transform_3(%arg0: i32) -> (i32, i32) {
    %c0_i32 = arith.constant 0 : i32
    %c0_i32_0 = arith.constant 0 : i32
    %c0_i32_1 = arith.constant 0 : i32
    return %c0_i32, %c0_i32_0 : i32, i32
  }
  func.func @transform_4(%arg0: i32) -> (i32, i32) {
    %c0_i32 = arith.constant 0 : i32
    %c0_i32_0 = arith.constant 0 : i32
    %c0_i32_1 = arith.constant 0 : i32
    return %c0_i32, %c0_i32_0 : i32, i32
  }
  func.func @transform_5(%arg0: i32) -> (i32, i32) {
    %c0_i32 = arith.constant 0 : i32
    %c0_i32_0 = arith.constant 0 : i32
    %c0_i32_1 = arith.constant 0 : i32
    return %c0_i32, %c0_i32_0 : i32, i32
  }
  func.func @transform_6(%arg0: i32) -> (i32, i32) {
    %c0_i32 = arith.constant 0 : i32
    %c0_i32_0 = arith.constant 0 : i32
    %c0_i32_1 = arith.constant 0 : i32
    return %c0_i32, %c0_i32_0 : i32, i32
  }
  func.func @transform_7(%arg0: i32) -> (i32, i32) {
    %c0_i32 = arith.constant 0 : i32
    %c0_i32_0 = arith.constant 0 : i32
    %c0_i32_1 = arith.constant 0 : i32
    return %c0_i32, %c0_i32_0 : i32, i32
  }
}

</mosaic_0001>

<bundles_post_ra>
// kernel: scene_forward.1
= control target key start
LH: loop header
LB: loop body
LE: loop exit
PB: predicated region body
PF: predicated region fallthrough
CT: control target
= control target key end

     0   :  { %v738_v0 = vmov 0   ;;  %v739_v3 = vmov 839922192   ;;  %v36_v5 = vlaneseq  ;;  %s741_s8 = smov 127   ;;  %s742_s9 = smov 112   ;;  %v745_v22 = vmov 0.0   ;;  %s1196_s1 = inlined_call_operand.vmem [shape: f32[3,1], index: 1, kind: input, shape index: {}]   ;;  %s1197_s2 = inlined_call_operand.vmem [shape: f32[3,1], index: 2, kind: input, shape index: {}]   ;;  %s1198_s0 = inlined_call_operand.vmem [shape: f32[3,512], index: 0, kind: input, shape index: {}]   ;;  %s1199_s4 = inlined_call_operand.vmem [shape: f32[8,1], index: 4, kind: input, shape index: {}]   ;;  %s1200_s3 = inlined_call_operand.vmem [shape: f32[8,32], index: 3, kind: input, shape index: {}]   ;;  %s1201_s5 = inlined_call_operand.vmem [shape: f32[5,8], index: 5, kind: input, shape index: {}]   ;;  %s1202_s6 = inlined_call_operand.vmem [shape: f32[5,1], index: 6, kind: input, shape index: {}]   ;;  %s1203_s7 = inlined_call_operand.vmem [shape: f32[5,2], index: 7, kind: output, shape index: {}]  }
   0x1   :  { %737 = vset.pattern.permute.xlu0 %v738_v0  ;;  %v28_v1 = vld [vmem:[%s1196_s1] sm:$0x7]  ;;  %v34_v4 = vunpack.c.l.s4 %v739_v3  ;;  %v27_v12 = vld [vmem:[%s1198_s0 + $0x8] sm:$0x77]  ;;  %s744_s10 = smov 17   ;;  %535 = vmatprep.mubr.f32.mxu1 %v745_v22  ;;  %s746_s11 = smov 15  }
   0x2   :  { %31 = vperm.xlu0 %737, %v28_v1   ;;  %v43_v2 = vld [vmem:[%s1197_s2] sm:$0x7]  ;;  %v37_v7 = vshrl.u32 %v36_v5, 7  ;;  %s740_s2 = smov 113   ;;  %372 = vst [vmem:[#allocation2 + $0x28] sm:$0xf8] %v745_v22  ;;  %464 = vmatprep.mubr.f32.mxu0 %v745_v22 }
   0x3   :  { %v35_v6 = vunpack.c.0.s8 %v34_v4  ;;  %v26_v11 = vld [vmem:[%s1198_s0] sm:$0x77]  ;;  %s743_s0 = smov 111   ;;  %369 = vst [vmem:[#allocation2 + $0x60] sm:$0xf8] %v745_v22  ;;  %s747_s12 = smov 1  }
   0x4   :  { %370 = vst [vmem:[#allocation2 + $0x70] sm:$0xf8] %v745_v22  ;;  %371 = vst [vmem:[#allocation2 + $0x78] sm:$0xf8] %v745_v22  ;;  %s748_s13 = smov 16   ;;  %v390_v24 = vld [vmem:[%s1199_s4] sm:$0xff] }
   0x5   :  { %v38_v8 = vsub.s32 %v35_v6, %v37_v7  ;;  %v836_v25 = vand.u32 127, %v36_v5 }
   0x6   :  { %46 = vperm.xlu0 %737, %v43_v2  }
   0x7   :  { %v61_v28 = vadd.s32 256, %v836_v25  ;;  %v62_v31 = vadd.s32 384, %v836_v25  ;;  %vm241_vm0 = vcmp.lt.s32.totalorder %v836_v25, 127  ;;  %vm278_vm7 = vcmp.lt.s32.totalorder %v836_v25, 113 }
   0x8   :  { %vm319_vm10 = vcmp.lt.s32.totalorder %v836_v25, 112  ;;  %vm1204_vm11 = vcmp.lt.s32.totalorder %v836_v25, 111 }
   0x9   :  { %v65_v32 = vshra.s32 %v61_v28, 4  ;;  %v66_v35 = vshra.s32 %v62_v31, 4  ;;  %v73_v36 = vand.u32 15, %v61_v28  ;;  %v74_v37 = vand.u32 15, %v62_v31 }
   0xa   :  { %v71_v31 = vand.u32 15, %v836_v25 }
   0xb   :  { %v852_v38 = vand.u32 15, %v65_v32  ;;  %v858_v41 = vand.u32 15, %v66_v35  ;;  %vm861_vm1 = vcmp.le.s32.totalorder %v73_v36, 14  ;;  %vm865_vm2 = vcmp.le.s32.totalorder %v74_v37, 14 }
   0xc   :  { %vm869_vm3 = vcmp.ge.s32.totalorder %v73_v36, 1  ;;  %vm876_vm5 = vcmp.ge.s32.totalorder %v74_v37, 1 }
   0xd   :  { %vm285_vm4 = vcmp.le.s32.totalorder %v852_v38, 14  ;;  %vm286_vm6 = vcmp.le.s32.totalorder %v858_v41, 14  ;;  %vm97_vm14 = vcmp.ge.s32.totalorder %v858_v41, 1  ;;  %vm96_vm15 = vcmp.ge.s32.totalorder %v852_v38, 1 }
   0xe   :  { %vm289_vm8 = vmand %vm285_vm4, %vm869_vm3 }
   0xf   :  { %vm290_vm9 = vmand %vm286_vm6, %vm876_vm5 }
  0x10   :  { %vm924_vm12 = vmand %vm285_vm4, %vm861_vm1 }
  0x11   :  { %vm360_vm13 = vmand %vm286_vm6, %vm865_vm2 }
  0x7d   :  { %v32_v9 = vpop.permute.xlu0 %31 }
  0x7e   :  { %v39_v10 = vrot.slane %v32_v9, %v38_v8  ;;  %v937_v9 = vadd.s32 128, %v836_v25 }
  0x80   :  { %v41_v14 = vmul.f32 %v39_v10, %v26_v11  ;;  %v42_v15 = vmul.f32 %v39_v10, %v27_v12  ;;  %v72_v37 = vand.u32 15, %v937_v9 }
  0x81   :  { %v47_v13 = vpop.permute.xlu0 %46 }
  0x82   :  { %v54_v16 = vrot.slane %v47_v13, %v38_v8 }
  0x84   :  { %v56_v17 = vadd.f32 %v54_v16, %v41_v14  ;;  %v57_v18 = vadd.f32 %v54_v16, %v42_v15  ;;  %v63_v14 = vshra.s32 %v836_v25, 4 }
  0x86   :  { %230 = vst [vmem:[#allocation2 + $0x68] sm:$0x70] %v56_v17  ;;  %232 = vst [vmem:[#allocation2 + $0x48] sm:$0x70] %v57_v18  ;;  %270 = vrot.lane.b32.xlu0 %v56_v17, %s740_s2  ;;  %233 = vrot.lane.b32.xlu1 %v56_v17, %s741_s8  ;;  %v226_v19 = vcombine.low %v57_v18, %v57_v18  ;;  %v225_v20 = vcombine.low %v56_v17, %v56_v17  ;;  %v964_v28 = vand.u32 15, %v63_v14 }
  0x87   :  { %v78_v21 = vcombine.high %v57_v18, %v57_v18  ;;  %v77_v23 = vcombine.high %v56_v17, %v56_v17 }
  0x88   :  { %231 = vst [vmem:[#allocation2 + $0x8] sm:$0x70] %v226_v19  ;;  %229 = vst [vmem:[#allocation2 + $0x50] sm:$0x70] %v225_v20 }
  0x8a   :  { %311 = vrot.lane.b32.xlu0 %v56_v17, %s742_s9  ;;  %274 = vrot.lane.b32.xlu1 %v57_v18, %s740_s2 }
  0x8e   :  { %344 = vrot.lane.b32.xlu0 %v56_v17, %s743_s0  ;;  %348 = vrot.lane.b32.xlu1 %v57_v18, %s743_s0 }
  0x92   :  { %237 = vrot.lane.b32.xlu0 %v57_v18, %s741_s8  ;;  %85 = vrot.lane.b32.xlu1 %v57_v18, %s744_s10 }
  0x96   :  { %315 = vrot.lane.b32.xlu0 %v57_v18, %s742_s9  ;;  %239 = vrot.lane.b32.xlu1 %v78_v21, %s741_s8 }
  0x9a   :  { %151 = vrot.lane.b32.xlu0 %v57_v18, %s746_s11  ;;  %276 = vrot.lane.b32.xlu1 %v78_v21, %s740_s2 }
  0x9e   :  { %196 = vrot.lane.b32.xlu0 %v57_v18, %s747_s12  ;;  %317 = vrot.lane.b32.xlu1 %v78_v21, %s742_s9 }
  0xa2   :  { %118 = vrot.lane.b32.xlu0 %v57_v18, %s748_s13  ;;  %350 = vrot.lane.b32.xlu1 %v78_v21, %s743_s0 }
  0xa6   :  { %153 = vrot.lane.b32.xlu1 %v78_v21, %s746_s11  ;;  %149 = vrot.lane.b32.xlu0 %v77_v23, %s746_s11 }
  0xaa   :  { %198 = vrot.lane.b32.xlu1 %v78_v21, %s747_s12  ;;  %116 = vrot.lane.b32.xlu0 %v77_v23, %s748_s13 }
  0xae   :  { %194 = vrot.lane.b32.xlu1 %v77_v23, %s747_s12  ;;  %87 = vrot.lane.b32.xlu0 %v78_v21, %s744_s10 }
  0xb2   :  { %120 = vrot.lane.b32.xlu1 %v78_v21, %s748_s13  ;;  %147 = vrot.lane.b32.xlu0 %v56_v17, %s746_s11 }
  0xb6   :  { %83 = vrot.lane.b32.xlu1 %v77_v23, %s744_s10  ;;  %235 = vrot.lane.b32.xlu0 %v77_v23, %s741_s8 }
  0xba   :  { %272 = vrot.lane.b32.xlu1 %v77_v23, %s740_s2  ;;  %313 = vrot.lane.b32.xlu0 %v77_v23, %s742_s9 }
  0xbe   :  { %346 = vrot.lane.b32.xlu1 %v77_v23, %s743_s0  ;;  %114 = vrot.lane.b32.xlu0 %v56_v17, %s748_s13 }
  0xc2   :  { %192 = vrot.lane.b32.xlu1 %v56_v17, %s747_s12  ;;  %393 = vperm.xlu0 %737, %v390_v24  }
  0xc6   :  { %81 = vrot.lane.b32.xlu1 %v56_v17, %s744_s10  ;;  %v64_v17 = vshra.s32 %v937_v9, 4 }
  0xc8   :  { %v971_v36 = vand.u32 15, %v64_v17 }
  0xf8   :  { %v838_v26 = vpop.permute.xlu0 %270  ;;  %v840_v27 = vpop.permute.xlu1 %233 }
  0xfc   :  { %v843_v29 = vpop.permute.xlu0 %311  ;;  %v845_v30 = vpop.permute.xlu1 %274 }
 0x100   :  { %v848_v33 = vpop.permute.xlu0 %344  ;;  %v850_v34 = vpop.permute.xlu1 %348 }
 0x104   :  { %v854_v39 = vpop.permute.xlu0 %237  ;;  %v856_v40 = vpop.permute.xlu1 %85 }
 0x108   :  { %v874_v45 = vpop.permute.xlu0 %315  ;;  %v240_v46 = vpop.permute.xlu1 %239 }
 0x109   :  { %v242_v48 = vsel %vm241_vm0, %v854_v39, %v240_v46  ;;  %v245_v49 = vsel %vm241_vm0, %v240_v46, %v840_v27 }
 0x10a   :  { %v248_v50 = vsel %vm861_vm1, %v242_v48, 0.0  ;;  %v249_v51 = vsel %vm865_vm2, %v245_v49, 0.0 }
 0x10b   :  { %v256_v52 = vrot.slane %v248_v50, 1  ;;  %v257_v53 = vrot.slane %v249_v51, 1 }
 0x10c   :  { %v152_v54 = vpop.permute.xlu0 %151  ;;  %v277_v55 = vpop.permute.xlu1 %276 }
 0x10d   :  { %264 = vst [vmem:[#allocation2 + $0x10] ss:$-4 sps:$4 sm:$0x83] %v256_v52   ;;  %265 = vst [vmem:[#allocation2 + $0x38] ss:$20 sps:$4 sm:$0x83] %v257_v53   ;;  %v279_v56 = vsel %vm278_vm7, %v845_v30, %v277_v55  ;;  %v282_v57 = vsel %vm278_vm7, %v277_v55, %v838_v26 }
 0x10e   :  { %v293_v58 = vsel %vm289_vm8, %v279_v56, 0.0  ;;  %v294_v59 = vsel %vm290_vm9, %v282_v57, 0.0  ;;  %vm166_vm8 = vmand %vm96_vm15, %vm861_vm1  ;;  %vm122_vm9 = vcmp.lt.s32.totalorder %v836_v25, 16  ;;  %vm89_vm1 = vcmp.lt.s32.totalorder %v836_v25, 17 }
 0x10f   :  { %v301_v60 = vrot.slane %v293_v58, 6  ;;  %v302_v61 = vrot.slane %v294_v59, 6 }
 0x110   :  { %v907_v62 = vpop.permute.xlu0 %196  ;;  %v318_v63 = vpop.permute.xlu1 %317 }
 0x111   :  { %309 = vst [vmem:[#allocation2 + $0x10] sm:$0x1c] %v301_v60  ;;  %310 = vst [vmem:[#allocation2 + $0x38] sm:$0x1c] %v302_v61  ;;  %v320_v0 = vsel %vm319_vm10, %v874_v45, %v318_v63  ;;  %v323_v1 = vsel %vm319_vm10, %v318_v63, %v843_v29 }
 0x112   :  { %v326_v2 = vsel %vm285_vm4, %v320_v0, 0.0  ;;  %v327_v3 = vsel %vm286_vm6, %v323_v1, 0.0  ;;  %vm155_vm4 = vcmp.lt.s32.totalorder %v836_v25, 15  ;;  %vm167_vm6 = vmand %vm97_vm14, %vm865_vm2  ;;  %vm1205_vm2 = vcmp.lt.s32.totalorder %v836_v25, 1 }
 0x113   :  { %v334_v5 = vrot.slane %v326_v2, 3  ;;  %v335_v6 = vrot.slane %v327_v3, 3 }
 0x114   :  { %v933_v7 = vpop.permute.xlu0 %118  ;;  %v351_v8 = vpop.permute.xlu1 %350 }
 0x115   :  { %342 = vst [vmem:[#allocation2 + $0x10] sm:$0xe0] %v334_v5  ;;  %343 = vst [vmem:[#allocation2 + $0x38] sm:$0xe0] %v335_v6  ;;  %v353_v10 = vsel %vm1204_vm11, %v850_v34, %v351_v8  ;;  %v356_v11 = vsel %vm1204_vm11, %v351_v8, %v848_v33  ;;  %vm1005_vm11 = vcmp.le.s32.totalorder %v72_v37, 14 }
 0x116   :  { %v363_v12 = vsel %vm924_vm12, %v353_v10, 0.0  ;;  %v364_v13 = vsel %vm360_vm13, %v356_v11, 0.0  ;;  %vm991_vm12 = vmand %vm97_vm14, %vm876_vm5  ;;  %vm94_vm13 = vcmp.ge.s32.totalorder %v964_v28, 1 }
 0x117   :  { %367 = vst [vmem:[#allocation2 + $0x78] sm:$0x7] %v363_v12  ;;  %368 = vst [vmem:[#allocation2 + $0x28] sm:$0x7] %v364_v13 }
 0x118   :  { %v154_v15 = vpop.permute.xlu1 %153  ;;  %v150_v16 = vpop.permute.xlu0 %149 }
 0x119   :  { %v156_v18 = vsel %vm155_vm4, %v152_v54, %v154_v15  ;;  %v157_v19 = vsel %vm155_vm4, %v150_v16, %v152_v54 }
 0x11a   :  { %v171_v20 = vsel %vm167_vm6, %v156_v18, 0.0  ;;  %v170_v21 = vsel %vm166_vm8, %v157_v19, 0.0  ;;  %vm996_vm6 = vcmp.le.s32.totalorder %v71_v31, 14  ;;  %vm1206_vm8 = vcmp.ge.s32.totalorder %v971_v36, 1 }
 0x11b   :  { %v179_v23 = vrot.slane %v171_v20, 2  ;;  %v178_v24 = vrot.slane %v170_v21, 2 }
 0x11c   :  { %v967_v32 = vpop.permute.xlu1 %198  ;;  %v969_v35 = vpop.permute.xlu0 %116  ;;  %v385_v57 = vld [vmem:[#allocation2 + $0x38] sm:$0xff]  ;;  %v384_v60 = vld [vmem:[#allocation2 + $0x10] sm:$0xff] }
 0x11d   :  { %187 = vst [vmem:[#allocation2 + $0x48] ss:$-44 sps:$4 sm:$0xc1] %v179_v23   ;;  %186 = vst [vmem:[#allocation2 + $0x8] ss:$84 sps:$4 sm:$0xc1] %v178_v24   ;;  %v201_v42 = vsel %vm1205_vm2, %v907_v62, %v967_v32  ;;  %v124_v43 = vsel %vm122_vm9, %v969_v35, %v933_v7 }
 0x11e   :  { %v208_v46 = vsel %vm876_vm5, %v201_v42, 0.0  ;;  %v129_v48 = vsel %vm96_vm15, %v124_v43, 0.0  ;;  %v389_v49 = vld [vmem:[#allocation2 + $0x28] sm:$0xff]  ;;  %v388_v50 = vld [vmem:[#allocation2 + $0x78] sm:$0xff]  ;;  %vm164_vm5 = vmand %vm94_vm13, %vm996_vm6 }
 0x11f   :  { %v216_v51 = vrot.slane %v208_v46, 7  ;;  %v137_v52 = vrot.slane %v129_v48, 5  ;;  %495 = vmatprep.subr.mxu1 %v389_v49 }
 0x120   :  { %496 = vmatpush1.msra.mxu1 %v388_v50  ;;  %v1000_v55 = vpop.permute.xlu1 %194  ;;  %v1002_v56 = vpop.permute.xlu0 %87 }
 0x121   :  { %224 = vst [vmem:[#allocation2 + $0x48] sm:$0xe] %v216_v51  ;;  %145 = vst [vmem:[#allocation2 + $0x58] sm:$0x38] %v137_v52  ;;  %v202_v58 = vsel %vm1205_vm2, %v1000_v55, %v907_v62  ;;  %v90_v59 = vsel %vm89_vm1, %v856_v40, %v1002_v56  ;;  %497 = vmatprep.subr.mxu1 %v385_v57  ;;  %v700_v52 = vld [vmem:[%s1202_s6] sm:$0x1f] }
 0x122   :  { %v207_v61 = vsel %vm869_vm3, %v202_v58, 0.0  ;;  %v109_v63 = vsel %vm991_vm12, %v90_v59, 0.0  ;;  %498 = vmatpush1.msra.mxu1 %v384_v60  ;;  %vm165_vm2 = vmand %vm1206_vm8, %vm1005_vm11  ;;  %vm1041_vm12 = vcmp.ge.s32.totalorder %v71_v31, 1 }
 0x123   :  { %v215_v62 = vrot.slane %v207_v61, 7  ;;  %113 = vst [vmem:[#allocation2 + $0x18] sm:$0x7] %v109_v63  ;;  %vm1049_vm8 = vmand %vm96_vm15, %vm869_vm3  ;;  %vm396_vm15 = vcmask 261120   ;;  %v373_v61 = vld [vmem:[%s1200_s3] sm:$0xff] }
 0x124   :  { %v1029_v0 = vpop.permute.xlu1 %120  ;;  %v148_v1 = vpop.permute.xlu0 %147 }
 0x125   :  { %223 = vst [vmem:[#allocation2 + $0x8] sm:$0xe] %v215_v62  ;;  %v123_v2 = vsel %vm122_vm9, %v933_v7, %v1029_v0  ;;  %v158_v3 = vsel %vm155_vm4, %v148_v1, %v150_v16  ;;  %v159_v4 = vsel %vm155_vm4, %v154_v15, %v148_v1  ;;  %vm283_vm4 = vcmp.le.s32.totalorder %v964_v28, 14 }
 0x126   :  { %v130_v5 = vsel %vm97_vm14, %v123_v2, 0.0  ;;  %v168_v6 = vsel %vm164_vm5, %v159_v4, 0.0  ;;  %v169_v8 = vsel %vm165_vm2, %v158_v3, 0.0  ;;  %vm1056_vm14 = vcmp.ge.s32.totalorder %v72_v37, 1  ;;  %vm1081_vm3 = vmand %vm283_vm4, %vm1041_vm12 }
 0x127   :  { %v138_v10 = vrot.slane %v130_v5, 5  ;;  %v176_v11 = vrot.slane %v168_v6, 2  ;;  %v177_v12 = vrot.slane %v169_v8, 2  ;;  %vm284_vm2 = vcmp.le.s32.totalorder %v971_v36, 14 }
 0x128   :  { %v1054_v41 = vpop.permute.xlu1 %83  ;;  %v236_v13 = vpop.permute.xlu0 %235  ;;  %v381_v14 = vld [vmem:[#allocation2 + $0x48] sm:$0xff] }
 0x129   :  { %146 = vst [vmem:[#allocation2 + $0x18] sm:$0x38] %v138_v10  ;;  %184 = vst [vmem:[#allocation2 + $0x50] ss:$-28 sps:$4 sm:$0xc1] %v176_v11   ;;  %v91_v38 = vsel %vm89_vm1, %v1054_v41, %v856_v40  ;;  %v243_v44 = vsel %vm241_vm0, %v236_v13, %v854_v39  ;;  %v244_v16 = vsel %vm241_vm0, %v840_v27, %v236_v13  ;;  %499 = vmatprep.subr.mxu1 %v381_v14 }
 0x12a   :  { %185 = vst [vmem:[#allocation2 + $0x68] ss:$-100 sps:$4 sm:$0xc1] %v177_v12   ;;  %v108_v17 = vsel %vm1049_vm8, %v91_v38, 0.0  ;;  %v246_v18 = vsel %vm996_vm6, %v244_v16, 0.0  ;;  %v247_v19 = vsel %vm1005_vm11, %v243_v44, 0.0  ;;  %vm1089_vm0 = vmand %vm284_vm2, %vm1056_vm14 }
 0x12b   :  { %112 = vst [vmem:[#allocation2 + $0x58] sm:$0x7] %v108_v17  ;;  %v254_v27 = vrot.slane %v246_v18, 1  ;;  %v255_v40 = vrot.slane %v247_v19, 1  ;;  %v546_v39 = vld [vmem:[%s1201_s5] sm:$0x1f] }
 0x12c   :  { %v273_v21 = vpop.permute.xlu1 %272  ;;  %v314_v23 = vpop.permute.xlu0 %313  ;;  %v380_v24 = vld [vmem:[#allocation2 + $0x8] sm:$0xff] }
 0x12d   :  { %262 = vst [vmem:[#allocation2 + $0x40] ss:$20 sps:$4 sm:$0x83] %v254_v27   ;;  %263 = vst [vmem:[#allocation2 + $0x20] ss:$76 sps:$4 sm:$0x83] %v255_v40   ;;  %v280_v31 = vsel %vm278_vm7, %v273_v21, %v845_v30  ;;  %v281_v37 = vsel %vm278_vm7, %v838_v26, %v273_v21  ;;  %v321_v42 = vsel %vm319_vm10, %v314_v23, %v874_v45  ;;  %500 = vmatpush1.msra.mxu1 %v380_v24 }
 0x12e   :  { %v322_v43 = vsel %vm319_vm10, %v843_v29, %v314_v23  ;;  %v291_v46 = vsel %vm1081_vm3, %v281_v37, 0.0  ;;  %v292_v48 = vsel %vm1089_vm0, %v280_v31, 0.0  ;;  %v325_v26 = vsel %vm284_vm2, %v321_v42, 0.0  ;;  %vm1117_vm7 = vmand %vm283_vm4, %vm996_vm6 }
 0x12f   :  { %v324_v30 = vsel %vm283_vm4, %v322_v43, 0.0  ;;  %v299_v29 = vrot.slane %v291_v46, 6  ;;  %v300_v49 = vrot.slane %v292_v48, 6  ;;  %v333_v51 = vrot.slane %v325_v26, 3  ;;  %vm1125_vm10 = vmand %vm284_vm2, %vm1005_vm11 }
 0x130   :  { %v332_v50 = vrot.slane %v324_v30, 3  ;;  %v347_v53 = vpop.permute.xlu1 %346  ;;  %v115_v54 = vpop.permute.xlu0 %114  ;;  %v377_v57 = vld [vmem:[#allocation2 + $0x18] sm:$0xff]  ;;  %vm1237_vm6 = vcmp.lt.s32.totalorder %v836_v25, 111  ;;  %vm1239_vm11 = vcmp.ge.s32.totalorder %v971_v36, 1  ;;  %vm102_vm4 = vmand %vm94_vm13, %vm1041_vm12 }
 0x131   :  { %307 = vst [vmem:[#allocation2 + $0x40] sm:$0x1c] %v299_v29  ;;  %308 = vst [vmem:[#allocation2 + $0x20] sm:$0x1c] %v300_v49  ;;  %v354_v58 = vsel %vm1237_vm6, %v347_v53, %v850_v34  ;;  %v125_v59 = vsel %vm122_vm9, %v115_v54, %v969_v35  ;;  %v126_v60 = vsel %vm122_vm9, %v1029_v0, %v115_v54  ;;  %501 = vmatprep.subr.mxu1 %v377_v57  ;;  %v710_v29 = vld [vmem:[%s1202_s6] sm:$0x1f] }
 0x132   :  { %340 = vst [vmem:[#allocation2 + $0x40] sm:$0xe0] %v332_v50  ;;  %341 = vst [vmem:[#allocation2 + $0x20] sm:$0xe0] %v333_v51  ;;  %v362_v63 = vsel %vm1125_vm10, %v354_v58, 0.0  ;;  %v128_v35 = vsel %vm1239_vm11, %v125_v59, 0.0 }
 0x133   :  { %vm1238_vm8 = vmmov %vm1237_vm6  ;;  %v376_v62 = vld [vmem:[#allocation2 + $0x58] sm:$0xff]  ;;  %366 = vst [vmem:[#allocation2 + $0x70] sm:$0x7] %v362_v63  ;;  %v136_v1 = vrot.slane %v128_v35, 5  ;;  %vm1240_vm9 = vcmp.lt.s32.totalorder %v836_v25, 1 }
 0x134   :  { %v355_v47 = vsel %vm1238_vm8, %v848_v33, %v347_v53  ;;  %v127_v33 = vsel %vm94_vm13, %v126_v60, 0.0  ;;  %502 = vmatpush1.msra.mxu1 %v376_v62  ;;  %v193_v2 = vpop.permute.xlu1 %192  ;;  %vm1241_vm5 = vmmov %vm1240_vm9  ;;  %vm693_vm13 = vcmask 1044480  }
 0x135   :  { %v361_v34 = vsel %vm1117_vm7, %v355_v47, 0.0  ;;  %v135_v0 = vrot.slane %v127_v33, 5  ;;  %723 = vmatmul.mubr.msk.f32.vlgmr.msra.gmra.mxu1 %vm396_vm15, %v373_v61  ;;  %144 = vst [vmem:[#allocation2] sm:$0x38] %v136_v1  ;;  %v203_v3 = vsel %vm1240_vm9, %v193_v2, %v1000_v55  ;;  %v204_v4 = vsel %vm1241_vm5, %v967_v32, %v193_v2  ;;  %vm1242_vm2 = vmmov %vm1239_vm11 }
 0x136   :  { %365 = vst [vmem:[#allocation2 + $0x60] sm:$0x7] %v361_v34  ;;  %686 = vmatprep.mubr.f32.mxu1 %v745_v22  ;;  %v205_v5 = vsel %vm1041_vm12, %v204_v4, 0.0  ;;  %v206_v6 = vsel %vm1056_vm14, %v203_v3, 0.0  ;;  %vm103_vm3 = vmand %vm1242_vm2, %vm1056_vm14  ;;  %vm702_vm12 = vcmask 4096   ;;  %vm716_vm14 = vcmask 12296  }
 0x137   :  { %143 = vst [vmem:[#allocation2 + $0x30] sm:$0x38] %v135_v0  ;;  %v213_v8 = vrot.slane %v205_v5, 7  ;;  %v214_v10 = vrot.slane %v206_v6, 7 }
 0x138   :  { %v82_v32 = vpop.permute.xlu1 %81 }
 0x139   :  { %221 = vst [vmem:[#allocation2 + $0x50] sm:$0xe] %v213_v8  ;;  %222 = vst [vmem:[#allocation2 + $0x68] sm:$0xe] %v214_v10  ;;  %v92_v55 = vsel %vm89_vm1, %v82_v32, %v1054_v41  ;;  %v93_v9 = vsel %vm89_vm1, %v1002_v56, %v82_v32  ;;  %v383_v36 = vld [vmem:[#allocation2 + $0x20] sm:$0xff]  ;;  %vm547_vm1 = vcmask 64512  }
 0x13a   :  { %v106_v28 = vsel %vm102_vm4, %v93_v9, 0.0  ;;  %v107_v11 = vsel %vm103_vm3, %v92_v55, 0.0  ;;  %v387_v12 = vld [vmem:[#allocation2 + $0x70] sm:$0xff]  ;;  %v382_v13 = vld [vmem:[#allocation2 + $0x40] sm:$0xff] }
 0x13b   :  { %110 = vst [vmem:[#allocation2 + $0x30] sm:$0x7] %v106_v28  ;;  %111 = vst [vmem:[#allocation2] sm:$0x7] %v107_v11  ;;  %424 = vmatprep.subr.mxu0 %v387_v12 }
 0x13d   :  { %v386_v7 = vld [vmem:[#allocation2 + $0x60] sm:$0xff]  ;;  %v394_v56 = vpop.permute.xlu0 %393 }
 0x13e   :  { %425 = vmatpush1.msra.mxu0 %v386_v7 }
 0x13f   :  { %426 = vmatprep.subr.mxu0 %v383_v36 }
 0x140   :  { %427 = vmatpush1.msra.mxu0 %v382_v13  ;;  %v379_v14 = vld [vmem:[#allocation2 + $0x68] sm:$0xff]  ;;  %v378_v15 = vld [vmem:[#allocation2 + $0x50] sm:$0xff] }
 0x141   :  { %428 = vmatprep.subr.mxu0 %v379_v14 }
 0x142   :  { %429 = vmatpush1.msra.mxu0 %v378_v15  ;;  %v375_v41 = vld [vmem:[#allocation2] sm:$0xff]  ;;  %v374_v38 = vld [vmem:[#allocation2 + $0x30] sm:$0xff] }
 0x143   :  { %430 = vmatprep.subr.mxu0 %v375_v41 }
 0x144   :  { %431 = vmatpush1.msra.mxu0 %v374_v38 }
 0x145   :  { %722 = vmatmul.mubr.msk.f32.vlgmr.msra.gmra.mxu0 %vm396_vm15, %v373_v61 }
 0x146   :  { %615 = vmatprep.mubr.f32.mxu0 %v745_v22 }
 0x1f5   :  { %v537_v25 = vpop.f32.mrf.mxu1 }
 0x1f6   :  { %v538_v44 = vadd.f32 %v537_v25, %v394_v56 }
 0x1f7   :  { %v539_v16 = vpop.f32.mrf.mxu1 }
 0x1f8   :  { %v540_v17 = vadd.f32 %v539_v16, %v394_v56  ;;  %v544_v19 = vmax.f32 %v538_v44, 0.0 }
 0x1fa   :  { %v545_v18 = vmax.f32 %v540_v17, 0.0 }
 0x1fc   :  { %652 = vmatprep.subr.mxu1 %v545_v18 }
 0x1fd   :  { %653 = vmatpush1.msra.mxu1 %v544_v19 }
 0x1fe   :  { %725 = vmatmul.mubr.msk.f32.vlgmr.msra.gmra.mxu1 %vm547_vm1, %v546_v39 }
 0x205   :  { %v466_v27 = vpop.f32.mrf.mxu0 }
 0x206   :  { %v467_v40 = vadd.f32 %v466_v27, %v394_v56 }
 0x207   :  { %v468_v20 = vpop.f32.mrf.mxu0 }
 0x208   :  { %v469_v21 = vadd.f32 %v468_v20, %v394_v56  ;;  %v542_v23 = vmax.f32 %v467_v40, 0.0 }
 0x20a   :  { %v543_v22 = vmax.f32 %v469_v21, 0.0 }
 0x20c   :  { %581 = vmatprep.subr.mxu0 %v543_v22 }
 0x20d   :  { %582 = vmatpush1.msra.mxu0 %v542_v23 }
 0x20e   :  { %724 = vmatmul.mubr.msk.f32.vlgmr.msra.gmra.mxu0 %vm547_vm1, %v546_v39 }
 0x2be   :  { %v688_v24 = vpop.f32.mrf.mxu1 }
 0x2bf   :  { %v704_v37 = vsel %vm693_vm13, %v688_v24, 0.0 }
 0x2c0   :  { %v690_v31 = vpop.f32.mrf.mxu1 }
 0x2c1   :  { %v705_v42 = vsel %vm693_vm13, %v690_v31, 0.0 }
 0x2c2   :  { %v706_v43 = vadd.f32 %v705_v42, %v704_v37 }
 0x2c4   :  { %707 = vadd.xlane.f32.xlu1 %v706_v43 }
 0x2ce   :  { %v617_v46 = vpop.f32.mrf.mxu0 }
 0x2cf   :  { %v694_v48 = vsel %vm693_vm13, %v617_v46, 0.0 }
 0x2d0   :  { %v619_v30 = vpop.f32.mrf.mxu0 }
 0x2d1   :  { %v695_v26 = vsel %vm693_vm13, %v619_v30, 0.0 }
 0x2d2   :  { %v696_v45 = vadd.f32 %v695_v26, %v694_v48 }
 0x2d4   :  { %697 = vadd.xlane.f32.xlu0 %v696_v45 }
 0x34d   :  { %v708_v49 = vpop.xlane.xlu1 %707 }
 0x34e   :  { %v709_v50 = vmul.f32 0.00390625, %v708_v49 }
 0x350   :  { %v711_v51 = vadd.f32 %v710_v29, %v709_v50 }
 0x352   :  { %713 = vrot.lane.b32.xlu0 %v711_v51, %s747_s12 }
 0x35d   :  { %v698_v53 = vpop.xlane.xlu0 %697 }
 0x35e   :  { %v699_v54 = vmul.f32 0.00390625, %v698_v53 }
 0x360   :  { %v701_v57 = vadd.f32 %v700_v52, %v699_v54 }
 0x362   :  { %703 = vst.msk [vmem:[%s1203_s7] sm:$0x1f] %vm702_vm12, %v701_v57 }
 0x3c4   :  { %v714_v58 = vpop.permute.xlu0 %713 }
 0x3c5   :  { %717 = vst.msk [vmem:[%s1203_s7] sm:$0x1f] %vm716_vm14, %v714_v58 }

</bundles_post_ra>
